<compile_context>
chip_gen: v5e
topology: v5e:2x2
jax: 0.10.0
libtpu: 0.0.40
codegen_flags: <defaults>
</compile_context>

<pallas_src>
import functools

import jax
import jax.numpy as jnp
from jax.experimental import pallas as pl
from jax.experimental.pallas import tpu as pltpu


# ------------------------------ tuning knobs ----------------------------------

TARGET_BLOCK_BYTES = 2 << 20      # aim for ~2 MiB of input per grid step
MAX_RESIDENT_BYTES = 32 << 20     # budget for 4x block (in+out double buffers);
                                  # conservative for v7x's 64 MiB physical VMEM
MAX_IMAGES_PER_BLOCK = 32         # keep the per-image unrolled loop small


def _round_up(a, b):
    return (a + b - 1) // b * b


def _largest_divisor_leq(n, k):
    k = max(1, min(n, k))
    while n % k:
        k -= 1
    return k


# ------------------------------ fused kernel ----------------------------------

def ca_fused_kernel(x_ref, wdt_ref, bd_ref, wu_ref, bu_ref, o_ref, *, inv_hw):
    """Channel attention for a block of nb images.

    x_ref  : (nb, C, HWp)  activations; channels on sublanes, pixels on lanes
    wdt_ref: (C, Cr)       down-proj weight, transposed (in-channels on sublanes)
    bd_ref : (1, Cr)       down-proj bias (row)
    wu_ref : (C, Cr)       up-proj weight (out-channels on sublanes)
    bu_ref : (C, 1)        up-proj bias (column)
    o_ref  : (nb, C, HWp)  output (same layout / dtype as input)
    """
    nb = x_ref.shape[0]
    wdt = wdt_ref[...]
    bd = bd_ref[...]
    wu = wu_ref[...]
    bu = bu_ref[...]
    for i in range(nb):
        # Global average pool over the spatial (lane) axis, accumulated in f32
        # directly off the input ref (no materialized full-image f32 copy).
        pooled = jnp.sum(x_ref[i].astype(jnp.float32), axis=1,
                         keepdims=True) * inv_hw                      # (C, 1)
        # 1x1 conv (C -> Cr) + ReLU as broadcast-mul + sublane reduce (VPU/XLU)
        z = jnp.maximum(
            jnp.sum(wdt * pooled, axis=0, keepdims=True) + bd, 0.0)   # (1, Cr)
        # 1x1 conv (Cr -> C) + sigmoid as broadcast-mul + lane reduce
        s = jax.nn.sigmoid(
            jnp.sum(wu * z, axis=1, keepdims=True) + bu)              # (C, 1)
        # Per-channel scale in the input dtype, lane-dense store.
        o_ref[i] = x_ref[i] * s.astype(o_ref.dtype)


# --------------------------- spatial-tiled fallback ----------------------------

def _pool_kernel(x_ref, o_ref, *, inv_hw):
    """Pool-accumulate over spatial tiles.  x_ref: (1, C, thw), o_ref: (1, C, 1) f32."""
    @pl.when(pl.program_id(1) == 0)
    def _():
        o_ref[...] = jnp.zeros_like(o_ref)
    o_ref[...] += jnp.sum(x_ref[...].astype(jnp.float32), axis=2,
                          keepdims=True) * inv_hw


def _scale_kernel(x_ref, s_ref, o_ref):
    """Per-channel scale over one spatial tile."""
    o_ref[...] = x_ref[...] * s_ref[...].astype(o_ref.dtype)


# --------------------------------- wrappers ------------------------------------

def _ca_fused(x, wdt, bd, wu, bu, *, per_img, weight_bytes, max_resident_bytes):
    N, C, H, W = x.shape
    hw = H * W
    hwp = _round_up(hw, 128)
    Cr = wdt.shape[1]
    dtype_bytes = jnp.dtype(x.dtype).itemsize

    x2 = x.reshape(N, C, hw)
    if hwp != hw:
        x2 = jnp.pad(x2, ((0, 0), (0, 0), (0, hwp - hw)))

    # Images per block: target a few MiB of DMA per grid step, respect the VMEM
    # budget (input + output double-buffered), keep >= 2 grid steps so both v7x
    # TensorCores get work, and keep the in-kernel unroll small.
    nb = max(1, TARGET_BLOCK_BYTES // per_img)
    nb = min(nb, max(1, max_resident_bytes // (4 * per_img)))
    nb = min(nb, MAX_IMAGES_PER_BLOCK)
    if N >= 2:
        nb = min(nb, N // 2)
    nb = _largest_divisor_leq(N, nb)

    block_bytes = nb * per_img
    vmem_limit = int(min(64 << 20,
                         max(32 << 20, 4 * block_bytes + weight_bytes + (4 << 20))))

    img_spec = pl.BlockSpec((nb, C, hwp), lambda n: (n, 0, 0))
    full = lambda shape: pl.BlockSpec(shape, lambda n, _r=len(shape): (0,) * _r)

    cost = pl.CostEstimate(
        flops=int(2 * N * C * hw + 4 * N * C * Cr),
        transcendentals=int(N * C),
        bytes_accessed=int(2 * N * C * hwp * dtype_bytes + weight_bytes),
    )

    out = pl.pallas_call(
        functools.partial(ca_fused_kernel, inv_hw=1.0 / hw),
        out_shape=jax.ShapeDtypeStruct((N, C, hwp), x.dtype),
        grid=(N // nb,),
        in_specs=[img_spec,
                  full((C, Cr)), full((1, Cr)),
                  full((C, Cr)), full((C, 1))],
        out_specs=img_spec,
        input_output_aliases={0: 0},    # x is dead after the scale-multiply
        compiler_params=pltpu.CompilerParams(
            dimension_semantics=("parallel",),
            vmem_limit_bytes=vmem_limit),
        cost_estimate=cost,
    )(x2, wdt, bd, wu, bu)

    if hwp != hw:
        out = out[:, :, :hw]
    return out.reshape(N, C, H, W)


def _ca_spatial_tiled(x, wdt, bd, wu, bu):
    """Fallback when a whole image (x4 double-buffered) blows the VMEM budget:
    pool-accumulate over spatial tiles, do the tiny FC branch in plain XLA,
    then a spatially-tiled scale kernel (x read twice, written once)."""
    N, C, H, W = x.shape
    hw = H * W
    dtype_bytes = jnp.dtype(x.dtype).itemsize

    thw = max(128, (TARGET_BLOCK_BYTES // (C * dtype_bytes)) // 128 * 128)
    thw = min(thw, max(128, (MAX_RESIDENT_BYTES // (4 * C * dtype_bytes)) // 128 * 128))
    thw = min(thw, _round_up(hw, 128))
    hwp = _round_up(hw, thw)
    n_hw = hwp // thw

    x2 = x.reshape(N, C, hw)
    if hwp != hw:
        x2 = jnp.pad(x2, ((0, 0), (0, 0), (0, hwp - hw)))

    vmem_limit = int(min(64 << 20,
                         max(32 << 20, 4 * C * thw * dtype_bytes + (4 << 20))))

    pooled = pl.pallas_call(
        functools.partial(_pool_kernel, inv_hw=1.0 / hw),
        out_shape=jax.ShapeDtypeStruct((N, C, 1), jnp.float32),
        grid=(N, n_hw),
        in_specs=[pl.BlockSpec((1, C, thw), lambda n, h: (n, 0, h))],
        out_specs=pl.BlockSpec((1, C, 1), lambda n, h: (n, 0, 0)),
        compiler_params=pltpu.CompilerParams(
            dimension_semantics=("parallel", "arbitrary"),
            vmem_limit_bytes=vmem_limit),
    )(x2)                                                         # (N, C, 1)

    # Tiny FC branch (O(N*C*Cr)) in plain XLA — negligible next to the HBM passes.
    y = pooled[:, :, 0]                                           # (N, C)
    z = jnp.maximum(y @ wdt + bd, 0.0)                            # (N, Cr)
    s = jax.nn.sigmoid(z @ wu.T + bu[:, 0][None, :])              # (N, C)
    s = s[:, :, None].astype(jnp.float32)                         # (N, C, 1)

    out = pl.pallas_call(
        _scale_kernel,
        out_shape=jax.ShapeDtypeStruct((N, C, hwp), x.dtype),
        grid=(N, n_hw),
        in_specs=[pl.BlockSpec((1, C, thw), lambda n, h: (n, 0, h)),
                  pl.BlockSpec((1, C, 1), lambda n, h: (n, 0, 0))],
        out_specs=pl.BlockSpec((1, C, thw), lambda n, h: (n, 0, h)),
        input_output_aliases={0: 0},
        compiler_params=pltpu.CompilerParams(
            dimension_semantics=("parallel", "parallel"),
            vmem_limit_bytes=vmem_limit),
    )(x2, s)

    if hwp != hw:
        out = out[:, :, :hw]
    return out.reshape(N, C, H, W)


def ca_forward(x, w_dn, b_dn, w_up, b_up, *, max_resident_bytes=MAX_RESIDENT_BYTES):
    """CALayer forward.  x: (N, C, H, W); weights in PyTorch Conv2d layout
    (w_dn: (Cr, C[,1,1]), b_dn: (Cr,), w_up: (C, Cr[,1,1]), b_up: (C,))."""
    N, C, H, W = x.shape
    Cr = w_dn.shape[0]
    hw = H * W
    dtype_bytes = jnp.dtype(x.dtype).itemsize

    # Kernel-side weight layouts (tiny); pre-transposed so there are no in-kernel
    # transposes/relayouts and no M=1/N=1 MXU matmuls.
    wdt = w_dn.reshape(Cr, C).T          # (C, Cr)
    bd = b_dn.reshape(1, Cr)             # (1, Cr)
    wu = w_up.reshape(C, Cr)             # (C, Cr)
    bu = b_up.reshape(C, 1)              # (C, 1)
    weight_bytes = (2 * C * Cr + Cr + C) * 4

    per_img = C * _round_up(hw, 128) * dtype_bytes
    if 4 * per_img <= max_resident_bytes:
        return _ca_fused(x, wdt, bd, wu, bu, per_img=per_img,
                         weight_bytes=weight_bytes,
                         max_resident_bytes=max_resident_bytes)
    return _ca_spatial_tiled(x, wdt, bd, wu, bu)


# --------------------------- params & pure-JAX reference -----------------------

def init_params(key, channel, reduction):
    """Weights in PyTorch Conv2d layout (out, in), 1x1 kernels squeezed."""
    cr = channel // reduction
    k1, k2, k3, k4 = jax.random.split(key, 4)
    w_dn = jax.random.normal(k1, (cr, channel), jnp.float32) * 0.1
    b_dn = jax.random.normal(k2, (cr,), jnp.float32) * 0.1
    w_up = jax.random.normal(k3, (channel, cr), jnp.float32) * 0.1
    b_up = jax.random.normal(k4, (channel,), jnp.float32) * 0.1
    return w_dn, b_dn, w_up, b_up


def ca_ref(x, w_dn, b_dn, w_up, b_up):
    """Matches torch CALayer.forward (NCHW)."""
    y = jnp.mean(x, axis=(2, 3))                                  # (N, C)
    z = jnp.maximum(y @ w_dn.T + b_dn[None, :], 0.0)              # (N, Cr)
    s = jax.nn.sigmoid(z @ w_up.T + b_up[None, :])                # (N, C)
    return x * s[:, :, None, None]


# ----------------------------------- main ---------------------------------------

if __name__ == "__main__":
    key = jax.random.PRNGKey(0)

    def run_case(N, C, H, W, reduction, case_key, **kw):
        kx, kp = jax.random.split(case_key)
        x = jax.random.normal(kx, (N, C, H, W), jnp.float32)
        w_dn, b_dn, w_up, b_up = init_params(kp, C, reduction)
        out = jax.block_until_ready(ca_forward(x, w_dn, b_dn, w_up, b_up, **kw))
        ref = ca_ref(x, w_dn, b_dn, w_up, b_up)
        err = float(jnp.max(jnp.abs(out - ref)))
        if not (out.shape == ref.shape and err < 1e-4):
            raise AssertionError(
                f"mismatch vs reference ({N},{C},{H},{W}): max_abs_err={err}")

    k1, k2, k3 = jax.random.split(key, 3)
    # Fused path: nb=2 images/block, 2 parallel grid steps (both v7x TCs busy).
    run_case(4, 16, 16, 16, 4, k1)
    # Fused path with non-128-multiple H*W (132 -> padded to 256, then cropped).
    run_case(2, 8, 12, 11, 4, k2)
    # Force the spatially-tiled VMEM-overflow fallback path.
    run_case(2, 16, 16, 16, 4, k3, max_resident_bytes=1)

    print("KERNEL_OK")
</pallas_src>

<mosaic_0001>
module attributes {stable_mosaic.version = 11 : i64} {
  func.func @ca_fused_kernel(%arg0: i32, %arg1: memref<2x16x256xf32, #tpu.memory_space<vmem>>, %arg2: memref<16x4xf32, #tpu.memory_space<vmem>>, %arg3: memref<1x4xf32, #tpu.memory_space<vmem>>, %arg4: memref<16x4xf32, #tpu.memory_space<vmem>>, %arg5: memref<16x1xf32, #tpu.memory_space<vmem>>, %arg6: memref<2x16x256xf32, #tpu.memory_space<vmem>>) attributes {dimension_semantics = [#tpu.dimension_semantics<parallel>], iteration_bounds = array<i64: 2>, scalar_prefetch = 0 : i64, scratch_operands = 0 : i64, tpu.core_type = #tpu.core_type<tc>, window_params = [{transform_indices = @transform_0, window_bounds = array<i64: 2, 16, 256>}, {pipeline_mode = #tpu.pipeline_mode<synchronous>, transform_indices = @transform_1, window_bounds = array<i64: 16, 4>}, {pipeline_mode = #tpu.pipeline_mode<synchronous>, transform_indices = @transform_2, window_bounds = array<i64: 1, 4>}, {pipeline_mode = #tpu.pipeline_mode<synchronous>, transform_indices = @transform_3, window_bounds = array<i64: 16, 4>}, {pipeline_mode = #tpu.pipeline_mode<synchronous>, transform_indices = @transform_4, window_bounds = array<i64: 16, 1>}, {transform_indices = @transform_5, window_bounds = array<i64: 2, 16, 256>}]} {
    %c0 = arith.constant 0 : index
    %c0_0 = arith.constant 0 : index
    %0 = vector.load %arg2[%c0, %c0_0] : memref<16x4xf32, #tpu.memory_space<vmem>>, vector<16x4xf32>
    %c0_1 = arith.constant 0 : index
    %c0_2 = arith.constant 0 : index
    %1 = vector.load %arg3[%c0_1, %c0_2] : memref<1x4xf32, #tpu.memory_space<vmem>>, vector<1x4xf32>
    %c0_3 = arith.constant 0 : index
    %c0_4 = arith.constant 0 : index
    %2 = vector.load %arg4[%c0_3, %c0_4] : memref<16x4xf32, #tpu.memory_space<vmem>>, vector<16x4xf32>
    %c0_5 = arith.constant 0 : index
    %c0_6 = arith.constant 0 : index
    %3 = vector.load %arg5[%c0_5, %c0_6] : memref<16x1xf32, #tpu.memory_space<vmem>>, vector<16x1xf32>
    %c0_7 = arith.constant 0 : index
    %c0_8 = arith.constant 0 : index
    %c0_9 = arith.constant 0 : index
    %4 = vector.load %arg1[%c0_7, %c0_8, %c0_9] : memref<2x16x256xf32, #tpu.memory_space<vmem>>, vector<1x16x256xf32>
    %5 = vector.shape_cast %4 : vector<1x16x256xf32> to vector<16x256xf32>
    %cst = arith.constant dense<0.000000e+00> : vector<16xf32>
    %6 = vector.multi_reduction <add>, %5, %cst [1] : vector<16x256xf32> to vector<16xf32>
    %7 = vector.shape_cast %6 : vector<16xf32> to vector<16x1xf32>
    %cst_10 = arith.constant 3.906250e-03 : f32
    %8 = vector.broadcast %cst_10 : f32 to vector<16x1xf32>
    %9 = arith.mulf %7, %8 : vector<16x1xf32>
    %10 = vector.broadcast %9 : vector<16x1xf32> to vector<16x4xf32>
    %11 = arith.mulf %0, %10 : vector<16x4xf32>
    %cst_11 = arith.constant dense<0.000000e+00> : vector<4xf32>
    %12 = vector.multi_reduction <add>, %11, %cst_11 [0] : vector<16x4xf32> to vector<4xf32>
    %13 = vector.shape_cast %12 : vector<4xf32> to vector<1x4xf32>
    %14 = arith.addf %13, %1 : vector<1x4xf32>
    %cst_12 = arith.constant 0.000000e+00 : f32
    %15 = vector.broadcast %cst_12 : f32 to vector<1x4xf32>
    %16 = arith.maximumf %14, %15 : vector<1x4xf32>
    %17 = vector.broadcast %16 : vector<1x4xf32> to vector<16x4xf32>
    %18 = arith.mulf %2, %17 : vector<16x4xf32>
    %cst_13 = arith.constant dense<0.000000e+00> : vector<16xf32>
    %19 = vector.multi_reduction <add>, %18, %cst_13 [1] : vector<16x4xf32> to vector<16xf32>
    %20 = vector.shape_cast %19 : vector<16xf32> to vector<16x1xf32>
    %21 = arith.addf %20, %3 : vector<16x1xf32>
    %22 = arith.negf %21 : vector<16x1xf32>
    %23 = math.exp %22 : vector<16x1xf32>
    %cst_14 = arith.constant 1.000000e+00 : f32
    %24 = vector.broadcast %cst_14 : f32 to vector<16x1xf32>
    %25 = arith.addf %24, %23 : vector<16x1xf32>
    %26 = arith.divf %24, %25 : vector<16x1xf32>
    %c0_15 = arith.constant 0 : index
    %c0_16 = arith.constant 0 : index
    %c0_17 = arith.constant 0 : index
    %27 = vector.load %arg1[%c0_15, %c0_16, %c0_17] : memref<2x16x256xf32, #tpu.memory_space<vmem>>, vector<1x16x256xf32>
    %28 = vector.shape_cast %27 : vector<1x16x256xf32> to vector<16x256xf32>
    %29 = vector.broadcast %26 : vector<16x1xf32> to vector<16x256xf32>
    %30 = arith.mulf %28, %29 : vector<16x256xf32>
    %c0_18 = arith.constant 0 : index
    %c0_19 = arith.constant 0 : index
    %c0_20 = arith.constant 0 : index
    %31 = vector.load %arg6[%c0_18, %c0_19, %c0_20] : memref<2x16x256xf32, #tpu.memory_space<vmem>>, vector<1x16x256xf32>
    %32 = vector.shape_cast %31 : vector<1x16x256xf32> to vector<16x256xf32>
    %33 = vector.shape_cast %30 : vector<16x256xf32> to vector<1x16x256xf32>
    tpu.vector_store %arg6[%c0_18, %c0_19, %c0_20], %33 {strides = array<i32>} : memref<2x16x256xf32, #tpu.memory_space<vmem>>, vector<1x16x256xf32>,
    %c1 = arith.constant 1 : index
    %c0_21 = arith.constant 0 : index
    %c0_22 = arith.constant 0 : index
    %34 = vector.load %arg1[%c1, %c0_21, %c0_22] : memref<2x16x256xf32, #tpu.memory_space<vmem>>, vector<1x16x256xf32>
    %35 = vector.shape_cast %34 : vector<1x16x256xf32> to vector<16x256xf32>
    %cst_23 = arith.constant dense<0.000000e+00> : vector<16xf32>
    %36 = vector.multi_reduction <add>, %35, %cst_23 [1] : vector<16x256xf32> to vector<16xf32>
    %37 = vector.shape_cast %36 : vector<16xf32> to vector<16x1xf32>
    %cst_24 = arith.constant 3.906250e-03 : f32
    %38 = vector.broadcast %cst_24 : f32 to vector<16x1xf32>
    %39 = arith.mulf %37, %38 : vector<16x1xf32>
    %40 = vector.broadcast %39 : vector<16x1xf32> to vector<16x4xf32>
    %41 = arith.mulf %0, %40 : vector<16x4xf32>
    %cst_25 = arith.constant dense<0.000000e+00> : vector<4xf32>
    %42 = vector.multi_reduction <add>, %41, %cst_25 [0] : vector<16x4xf32> to vector<4xf32>
    %43 = vector.shape_cast %42 : vector<4xf32> to vector<1x4xf32>
    %44 = arith.addf %43, %1 : vector<1x4xf32>
    %cst_26 = arith.constant 0.000000e+00 : f32
    %45 = vector.broadcast %cst_26 : f32 to vector<1x4xf32>
    %46 = arith.maximumf %44, %45 : vector<1x4xf32>
    %47 = vector.broadcast %46 : vector<1x4xf32> to vector<16x4xf32>
    %48 = arith.mulf %2, %47 : vector<16x4xf32>
    %cst_27 = arith.constant dense<0.000000e+00> : vector<16xf32>
    %49 = vector.multi_reduction <add>, %48, %cst_27 [1] : vector<16x4xf32> to vector<16xf32>
    %50 = vector.shape_cast %49 : vector<16xf32> to vector<16x1xf32>
    %51 = arith.addf %50, %3 : vector<16x1xf32>
    %52 = arith.negf %51 : vector<16x1xf32>
    %53 = math.exp %52 : vector<16x1xf32>
    %cst_28 = arith.constant 1.000000e+00 : f32
    %54 = vector.broadcast %cst_28 : f32 to vector<16x1xf32>
    %55 = arith.addf %54, %53 : vector<16x1xf32>
    %56 = arith.divf %54, %55 : vector<16x1xf32>
    %c1_29 = arith.constant 1 : index
    %c0_30 = arith.constant 0 : index
    %c0_31 = arith.constant 0 : index
    %57 = vector.load %arg1[%c1_29, %c0_30, %c0_31] : memref<2x16x256xf32, #tpu.memory_space<vmem>>, vector<1x16x256xf32>
    %58 = vector.shape_cast %57 : vector<1x16x256xf32> to vector<16x256xf32>
    %59 = vector.broadcast %56 : vector<16x1xf32> to vector<16x256xf32>
    %60 = arith.mulf %58, %59 : vector<16x256xf32>
    %c1_32 = arith.constant 1 : index
    %c0_33 = arith.constant 0 : index
    %c0_34 = arith.constant 0 : index
    %61 = vector.load %arg6[%c1_32, %c0_33, %c0_34] : memref<2x16x256xf32, #tpu.memory_space<vmem>>, vector<1x16x256xf32>
    %62 = vector.shape_cast %61 : vector<1x16x256xf32> to vector<16x256xf32>
    %63 = vector.shape_cast %60 : vector<16x256xf32> to vector<1x16x256xf32>
    tpu.vector_store %arg6[%c1_32, %c0_33, %c0_34], %63 {strides = array<i32>} : memref<2x16x256xf32, #tpu.memory_space<vmem>>, vector<1x16x256xf32>,
    return
  }
  func.func @transform_0(%arg0: i32) -> (i32, i32, i32) {
    %c0_i32 = arith.constant 0 : i32
    %c0_i32_0 = arith.constant 0 : i32
    %c0_i32_1 = arith.constant 0 : i32
    return %arg0, %c0_i32, %c0_i32_0 : i32, i32, i32
  }
  func.func @transform_1(%arg0: i32) -> (i32, i32) {
    %c0_i32 = arith.constant 0 : i32
    %c0_i32_0 = arith.constant 0 : i32
    %c0_i32_1 = arith.constant 0 : i32
    return %c0_i32, %c0_i32_0 : i32, i32
  }
  func.func @transform_2(%arg0: i32) -> (i32, i32) {
    %c0_i32 = arith.constant 0 : i32
    %c0_i32_0 = arith.constant 0 : i32
    %c0_i32_1 = arith.constant 0 : i32
    return %c0_i32, %c0_i32_0 : i32, i32
  }
  func.func @transform_3(%arg0: i32) -> (i32, i32) {
    %c0_i32 = arith.constant 0 : i32
    %c0_i32_0 = arith.constant 0 : i32
    %c0_i32_1 = arith.constant 0 : i32
    return %c0_i32, %c0_i32_0 : i32, i32
  }
  func.func @transform_4(%arg0: i32) -> (i32, i32) {
    %c0_i32 = arith.constant 0 : i32
    %c0_i32_0 = arith.constant 0 : i32
    %c0_i32_1 = arith.constant 0 : i32
    return %c0_i32, %c0_i32_0 : i32, i32
  }
  func.func @transform_5(%arg0: i32) -> (i32, i32, i32) {
    %c0_i32 = arith.constant 0 : i32
    %c0_i32_0 = arith.constant 0 : i32
    %c0_i32_1 = arith.constant 0 : i32
    return %arg0, %c0_i32, %c0_i32_0 : i32, i32, i32
  }
}

</mosaic_0001>

<bundles_post_ra>
// kernel: tpu_custom_call.1
= control target key start
LH: loop header
LB: loop body
LE: loop exit
PB: predicated region body
PF: predicated region fallthrough
CT: control target
= control target key end

     0   :  { %10 = vsyncpa [#allocation3], 0  ;;  %s959_s0 = inlined_call_operand.hbm [shape: f32[4,16,256], index: 0, kind: input, shape index: {}, may-alias: {0,5}]   ;;  %s960_s1 = inlined_call_operand.vmem [shape: f32[16,4], index: 1, kind: input, shape index: {}]   ;;  %s961_s2 = inlined_call_operand.vmem [shape: f32[1,4], index: 2, kind: input, shape index: {}]   ;;  %s962_s3 = inlined_call_operand.vmem [shape: f32[16,4], index: 3, kind: input, shape index: {}]   ;;  %s963_s4 = inlined_call_operand.vmem [shape: f32[16,1], index: 4, kind: input, shape index: {}]   ;;  %s964_s5 = inlined_call_operand.hbm [shape: f32[4,16,256], index: 5, kind: output, shape index: {}, may-alias: {0,5}]  }
   0x1   :  { %12 = vsyncpa [#allocation3 + $0x1], 0 }
   0x2   :  { %13 = vsyncpa [#allocation4], 0 }
   0x3   :  { %15 = vsyncpa [#allocation4 + $0x1], 0  ;;  %s767_s18 = smov 0   ;;  %s769_s19 = smov 0  }
   0x4   :  { %s771_s20 = smov 0   ;;  %s773_s21 = smov 0  }
   0x5 LB: > { %s788_s22 = sadd.s32 4294967295, %s730_s21   ;;  %s532_s23 = sadd.s32 4294967294, %s730_s21   ;;  %s730_s21 = sphi %s773_s21, %s974_s21   ;;  %s726_s20 = sphi %s771_s20, %s973_s20   ;;  %s722_s19 = sphi %s769_s19, %s972_s19   ;;  %s718_s18 = sphi %s767_s18, %s971_s18  }
   0x6   : > { %s792_s24 = sadd.s32 1, %s730_s21   ;;  %s28_s25 = sadd.s32 1, %s726_s20 }
   0x7   : > { %s25_s26 = ssub.s32 %s730_s21, %s792_s24  ;;  %p35_p0 = scmp.ne.s32.totalorder %s726_s20, %s722_s19 }
   0x8   : > { %p26_p1 = scmp.eq.s32.totalorder %s25_s26, 0  ;;  %p36_p2 = scmp.eq.s32.totalorder %s730_s21, 0 }
   0x9   : > { %p41_p3 = scmp.ne.s32.totalorder %s722_s19, %s718_s18  ;;  %p42_p4 = scmp.eq.s32.totalorder %s788_s22, 0 }
   0xa   : > { %s804_s27 = scalar_select %p26_p1, %s726_s20, %s28_s25  }
   0xb   : > { %p806_p5 = por %p36_p2, %p35_p0  ;;  %p810_p6 = por %p42_p4, %p41_p3 }
   0xc   : > { %p149_p7 = scmp.eq.s32.totalorder %s788_s22, 1  ;;  %p155_p8 = scmp.eq.s32.totalorder %s532_s23, 1 }
   0xd   : > { %p576_p10 = scmp.lt.s32.totalorder %s730_s21, 2  ;;  %s187_s7 = sand.u32 1, %s726_s20  }
   0xe   : > { %p817_p11 = por %p149_p7, %p35_p0  ;;  %p821_p12 = por %p155_p8, %p41_p3 }
   0xf   : > { %s561_s8 = sshll.u32 %s730_s21, 6  ;;  %s535_s9 = sshll.u32 %s187_s7, 6 }
  0x10   : > { %s197_s12 = scalar_lea.hbm %s959_s0, %s561_s8  ;;  %s191_s14 = scalar_lea.vmem [#allocation2], %s535_s9 }
  0x11   : > { %s198_s13 = sshll.u32 %s197_s12, 4  ;;  %s200_s15 = sshll.u32 %s191_s14, 4  ;;  %s199_s13 = int_to_ptr.hbm [resolvable:$true] %s198_s13  ;;  %s201_s15 = int_to_ptr.vmem [resolvable:$true] %s200_s15 }
  0x12   : > { %p832_p13 = pnand %p576_p10, %p806_p5  ;;  %p539_p0 = scmp.ge.s32.totalorder %s730_s21, 1 }
  0x13   : > { %p208_p1 = scmp.lt.s32.totalorder %s730_s21, 3  ;;  %s188_s17 = scalar_lea.sflag [#allocation3], %s187_s7 }
  0x14   : > { %s634_s23 = sshra.s32 %s199_s13, 4  ;;  %p638_p3 = pneg %p832_p13  ;;  %s635_s23 = int_to_ptr.hbm [resolvable:$true] %s634_s23 }
  0x15   : > { %s636_s25 = scalar_lea.hbm %s635_s23, 64  ;;  %s641_s28 = scalar_lea.hbm %s959_s0, 128 }
  0x16   : > { %p637_p2 = scmp.ne.s32.totalorder %s635_s23, %s636_s25  ;;  %p642_p5 = scmp.lt.s32.totalorder %s635_s23, %s959_s0 }
  0x17   : > { %p643_p8 = scmp.lt.s32.totalorder %s641_s28, %s636_s25 }
  0x18   : > { %p639_p4 = pnand %p638_p3, %p637_p2 }
  0x19   : > { %p644_p10 = por %p643_p8, %p642_p5 }
  0x1a   : > { %p640_p7 = pneg %p639_p4 }
  0x1c   : > { %p645_p9 = pnand %p644_p10, %p640_p7 }
  0x1e   : > { %648 = shalt.err (!%p645_p9)
}
  0x1f   : > { %s732_s7 = smov 256   ;;  %s733_s11 = smov 16  }
  0x20   : > { %571 = dma.hbm_to_vmem [thread:$0]  (!%p832_p13), %s199_s13, 1024, %s201_s15, %s188_s17, %s732_s7, %s732_s7, %s733_s11  }
  0x21   : > { %p209_p2 = pnand %p539_p0, %p208_p1 }
  0x22   : > { %s853_s12 = sand.u32 (!%p209_p2), 1, %s722_s19  }
  0x23   : > { %212 = sbr.rel (%p209_p2) target bundleno = 476 (0x1dc), region = 40  ;;  %s540_s14 = sshll.u32 (!%p209_p2), %s853_s12, 6 }
  0x24   : > { %s215_s23 = scalar_lea.sflag (!%p209_p2), [#allocation3], %s853_s12  ;;  %s218_s25 = scalar_lea.vmem (!%p209_p2), [#allocation2], %s540_s14 }
  0x28   : > { %709 = dma.done.wait (%p810_p6), %s215_s23, 1024  }
  0x29   : > { %711 = vsyncadd (%p810_p6), %s215_s23, 4294966272  ;;  %v863_v0 = vld [vmem:[%s218_s25 + $0x20] sm:$0xff]  ;;  %v865_v1 = vld [vmem:[%s218_s25 + $0x28] sm:$0xff]  ;;  %vm269_vm0 = vcmask 31744   ;;  %v734_v61 = vmov 0   ;;  %s245_s29 = scalar_lea.vmem [#allocation5], %s540_s14 }
  0x2a   : > { %v867_v2 = vld [vmem:[%s218_s25] sm:$0xff]  ;;  %v353_v3 = vadd.f32 %v865_v1, %v863_v0  ;;  %v871_v4 = vld [vmem:[%s218_s25 + $0x8] sm:$0xff]  ;;  %v875_v6 = vld [vmem:[%s218_s25 + $0x30] sm:$0xff]  ;;  %617 = vset.pattern.permute.xlu1 %v734_v61  ;;  %615 = vset.pattern.permute.xlu2 %v734_v61  ;;  %s563_s13 = sshll.u32 %s788_s22, 6  ;;  %s456_s17 = sshll.u32 %s245_s29, 4  ;;  %s457_s17 = int_to_ptr.vmem [resolvable:$true] %s456_s17 }
  0x2b   : > { %v259_v5 = vadd.f32 %v871_v4, %v867_v2  ;;  %v877_v7 = vld [vmem:[%s218_s25 + $0x38] sm:$0xff]  ;;  %v879_v8 = vld [vmem:[%s218_s25 + $0x10] sm:$0xff]  ;;  %v248_v15 = vld [vmem:[%s960_s1] sm:$0xff]  ;;  %616 = vset.pattern.permute.xlu0 %v734_v61  ;;  %s455_s16 = scalar_lea.hbm %s964_s5, %s563_s13  ;;  %s443_s8 = scalar_lea.sflag [#allocation4], %s853_s12 }
  0x2c   : > { %354 = vadd.xlane.f32.xlu1 %v353_v3  ;;  %v881_v9 = vld [vmem:[%s218_s25 + $0x18] sm:$0xff]  ;;  %v356_v10 = vadd.f32 %v877_v7, %v875_v6  ;;  %v249_v19 = vld [vmem:[%s960_s1 + $0x8] sm:$0xff]  ;;  %v250_v41 = vld [vmem:[%s961_s2] sm:$0x1]  ;;  %s458_s26 = sshll.u32 %s455_s16, 4  ;;  %s684_s7 = scalar_lea.hbm %s964_s5, 128  ;;  %s459_s26 = int_to_ptr.hbm [resolvable:$true] %s458_s26 }
  0x2d   : > { %260 = vadd.xlane.f32.xlu0 %v259_v5  ;;  %v262_v11 = vadd.f32 %v881_v9, %v879_v8  ;;  %v252_v48 = vld [vmem:[%s962_s3 + $0x8] sm:$0xff]  ;;  %v251_v49 = vld [vmem:[%s962_s3] sm:$0xff]  ;;  %s678_s28 = sshra.s32 %s459_s26, 4  ;;  %s679_s28 = int_to_ptr.hbm [resolvable:$true] %s678_s28 }
  0x2e   : > { %v254_v62 = vld [vmem:[%s963_s4 + $0x8] sm:$0xff]  ;;  %v253_v63 = vld [vmem:[%s963_s4] sm:$0xff]  ;;  %s680_s22 = scalar_lea.hbm %s679_s28, 64  ;;  %p685_p0 = scmp.lt.s32.totalorder %s679_s28, %s964_s5 }
  0x2f   : > { %p681_p6 = scmp.ne.s32.totalorder %s679_s28, %s680_s22  ;;  %p686_p1 = scmp.lt.s32.totalorder %s684_s7, %s680_s22 }
  0x31   : > { %p682_p9 = pnand %p681_p6, %p817_p11  ;;  %p687_p3 = por %p686_p1, %p685_p0 }
  0x33   : > { %p683_p13 = pneg %p682_p9 }
  0x34   : > { %357 = vadd.xlane.f32.xlu1 %v356_v10 }
  0x35   : > { %263 = vadd.xlane.f32.xlu0 %v262_v11  ;;  %p688_p4 = pnand %p687_p3, %p683_p13 }
  0x9f   : > { %v355_v12 = vpop.xlane.xlu1 %354 }
  0xa0   : > { %v261_v13 = vpop.xlane.xlu0 %260  ;;  %v359_v14 = vmul.f32 0.00390625, %v355_v12 }
  0xa1   : > { %v265_v16 = vmul.f32 0.00390625, %v261_v13 }
  0xa2   : > { %v361_v17 = vmul.f32 %v359_v14, %v248_v15 }
  0xa3   : > { %v267_v22 = vmul.f32 %v265_v16, %v248_v15 }
  0xa4   : > { %v363_v24 = vsel %vm269_vm0, %v361_v17, 0.0 }
  0xa5   : > { %v270_v28 = vsel %vm269_vm0, %v267_v22, 0.0 }
  0xa7   : > { %v358_v18 = vpop.xlane.xlu1 %357 }
  0xa8   : > { %v360_v20 = vmul.f32 0.00390625, %v358_v18  ;;  %v264_v21 = vpop.xlane.xlu0 %263 }
  0xa9   : > { %v266_v23 = vmul.f32 0.00390625, %v264_v21 }
  0xaa   : > { %v362_v25 = vmul.f32 %v360_v20, %v249_v19 }
  0xab   : > { %v268_v26 = vmul.f32 %v266_v23, %v249_v19 }
  0xac   : > { %v364_v27 = vsel %vm269_vm0, %v362_v25, 0.0 }
  0xad   : > { %v365_v29 = vadd.f32 %v364_v27, %v363_v24  ;;  %v271_v30 = vsel %vm269_vm0, %v268_v26, 0.0 }
  0xae   : > { %v272_v31 = vadd.f32 %v271_v30, %v270_v28 }
  0xaf   : > { %v366_v32 = vrot.slane %v365_v29, 4 }
  0xb0   : > { %v273_v33 = vrot.slane %v272_v31, 4 }
  0xb1   : > { %v367_v34 = vadd.f32 %v366_v32, %v365_v29 }
  0xb2   : > { %v274_v35 = vadd.f32 %v273_v33, %v272_v31 }
  0xb3   : > { %v368_v36 = vrot.slane %v367_v34, 2 }
  0xb4   : > { %v275_v37 = vrot.slane %v274_v35, 2 }
  0xb5   : > { %v369_v38 = vadd.f32 %v368_v36, %v367_v34 }
  0xb6   : > { %v276_v39 = vadd.f32 %v275_v37, %v274_v35 }
  0xb7   : > { %v370_v40 = vrot.slane %v369_v38, 1 }
  0xb8   : > { %v277_v42 = vrot.slane %v276_v39, 1 }
  0xb9   : > { %v371_v43 = vadd.f32 %v370_v40, %v369_v38 }
  0xba   : > { %v278_v44 = vadd.f32 %v277_v42, %v276_v39 }
  0xbb   : > { %v372_v45 = vadd.f32 %v371_v43, %v250_v41 }
  0xbc   : > { %v279_v46 = vadd.f32 %v278_v44, %v250_v41 }
  0xbd   : > { %v373_v47 = vmax.f32 %v372_v45, 0.0 }
  0xbe   : > { %v280_v50 = vmax.f32 %v279_v46, 0.0 }
  0xbf   : > { %v374_v51 = vperm.slane %v373_v47, 0 }
  0xc0   : > { %v281_v52 = vperm.slane %v280_v50, 0 }
  0xc1   : > { %v376_v53 = vmul.f32 %v374_v51, %v252_v48  ;;  %v375_v54 = vmul.f32 %v374_v51, %v251_v49 }
  0xc2   : > { %v282_v55 = vmul.f32 %v281_v52, %v251_v49  ;;  %v283_v59 = vmul.f32 %v281_v52, %v252_v48 }
  0xc3   : > { %v380_v56 = vsel %vm269_vm0, %v376_v53, 0.0  ;;  %v377_v57 = vsel %vm269_vm0, %v375_v54, 0.0 }
  0xc4   : > { %381 = vadd.xlane.f32.xlu1 %v380_v56  ;;  %378 = vadd.xlane.f32.xlu0 %v377_v57  ;;  %v284_v58 = vsel %vm269_vm0, %v282_v55, 0.0  ;;  %v287_v60 = vsel %vm269_vm0, %v283_v59, 0.0 }
  0xc5   : > { %285 = vadd.xlane.f32.xlu2 %v284_v58 }
  0xcd   : > { %288 = vadd.xlane.f32.xlu2 %v287_v60 }
 0x137   : > { %v382_v3 = vpop.xlane.xlu1 %381  ;;  %v379_v5 = vpop.xlane.xlu0 %378 }
 0x138   : > { %v384_v10 = vadd.f32 %v382_v3, %v254_v62  ;;  %v383_v11 = vadd.f32 %v379_v5, %v253_v63  ;;  %v286_v12 = vpop.xlane.xlu2 %285 }
 0x139   : > { %v290_v13 = vadd.f32 %v286_v12, %v253_v63 }
 0x13a   : > { %v549_v14 = vmul.f32 -1.442695, %v384_v10  ;;  %v548_v15 = vmul.f32 -1.442695, %v383_v11 }
 0x13b   : > { %v542_v16 = vmul.f32 -1.442695, %v290_v13 }
 0x13c   : > { %618 = vpow2.f32 %v549_v14 }
 0x13d   : > { %620 = vpow2.f32 %v548_v15 }
 0x13e   : > { %622 = vpow2.f32 %v542_v16 }
 0x140   : > { %v289_v17 = vpop.xlane.xlu2 %288 }
 0x141   : > { %v291_v18 = vadd.f32 %v289_v17, %v254_v62 }
 0x142   : > { %v619_v19 = vpop.eup %618 }
 0x143   : > { %v621_v20 = vpop.eup %620  ;;  %v392_v21 = vadd.f32 1.0, %v619_v19  ;;  %v543_v24 = vmul.f32 -1.442695, %v291_v18 }
 0x144   : > { %v623_v22 = vpop.eup %622  ;;  %v391_v23 = vadd.f32 1.0, %v621_v20 }
 0x145   : > { %624 = vrcp.f32 %v392_v21  ;;  %v298_v25 = vadd.f32 1.0, %v623_v22  ;;  %v419_v55 = vand.u32 2147483648, %v392_v21  ;;  %vm413_vm10 = vweird.f32 %v392_v21 }
 0x146   : > { %626 = vrcp.f32 %v391_v23  ;;  %v402_v35 = vand.u32 2147483647, %v391_v23  ;;  %v404_v36 = vand.u32 2147483648, %v391_v23  ;;  %vm398_vm3 = vweird.f32 %v391_v23 }
 0x147   : > { %628 = vrcp.f32 %v298_v25  ;;  %v311_v40 = vand.u32 2147483648, %v298_v25  ;;  %v309_v42 = vand.u32 2147483647, %v298_v25  ;;  %vm305_vm5 = vweird.f32 %v298_v25 }
 0x148   : > { %630 = vpow2.f32 %v543_v24  ;;  %v405_v44 = vor.u32 1.1754944e-38, %v404_v36  ;;  %vm403_vm6 = vcmp.eq.f32.partialorder %v402_v35, 8.507059e+37  ;;  %v417_v56 = vand.u32 2147483647, %v392_v21 }
 0x149   : > { %v312_v48 = vor.u32 1.1754944e-38, %v311_v40  ;;  %vm310_vm8 = vcmp.eq.f32.partialorder %v309_v42, 8.507059e+37  ;;  %v420_v62 = vor.u32 1.1754944e-38, %v419_v55 }
 0x14a   : > { %vm418_vm13 = vcmp.eq.f32.partialorder %v417_v56, 8.507059e+37 }
 0x14b   : > { %v625_v26 = vpop.eup %624 }
 0x14c   : > { %v627_v27 = vpop.eup %626  ;;  %v409_v28 = vmul.f32 %v625_v26, %v392_v21  ;;  %vm414_vm9 = vweird.f32 %v625_v26 }
 0x14d   : > { %v629_v29 = vpop.eup %628  ;;  %v394_v30 = vmul.f32 %v627_v27, %v391_v23  ;;  %vm399_vm1 = vweird.f32 %v627_v27  ;;  %vm415_vm11 = vmor %vm413_vm10, %vm414_vm9 }
 0x14e   : > { %v631_v31 = vpop.eup %630  ;;  %v301_v32 = vmul.f32 %v629_v29, %v298_v25  ;;  %v410_v38 = vsub.f32 1.0, %v409_v28  ;;  %vm306_vm2 = vweird.f32 %v629_v29  ;;  %vm400_vm4 = vmor %vm398_vm3, %vm399_vm1 }
 0x14f   : > { %v299_v33 = vadd.f32 1.0, %v631_v31  ;;  %v395_v34 = vsub.f32 1.0, %v394_v30  ;;  %vm307_vm7 = vmor %vm305_vm5, %vm306_vm2 }
 0x150   : > { %v302_v37 = vsub.f32 1.0, %v301_v32  ;;  %v411_v46 = vmul.f32 %v625_v26, %v410_v38 }
 0x151   : > { %632 = vrcp.f32 %v299_v33  ;;  %v396_v39 = vmul.f32 %v627_v27, %v395_v34  ;;  %v326_v58 = vand.u32 2147483648, %v299_v33  ;;  %v324_v61 = vand.u32 2147483647, %v299_v33 }
 0x152   : > { %v303_v41 = vmul.f32 %v629_v29, %v302_v37  ;;  %v412_v53 = vadd.f32 %v625_v26, %v411_v46  ;;  %vm320_vm14 = vweird.f32 %v299_v33 }
 0x153   : > { %v397_v43 = vadd.f32 %v627_v27, %v396_v39  ;;  %v327_v5 = vor.u32 1.1754944e-38, %v326_v58  ;;  %vm325_vm0 = vcmp.eq.f32.partialorder %v324_v61, 8.507059e+37 }
 0x154   : > { %v304_v45 = vadd.f32 %v629_v29, %v303_v41  ;;  %v416_v59 = vsel %vm415_vm11, %v625_v26, %v412_v53 }
 0x155   : > { %v401_v47 = vsel %vm400_vm4, %v627_v27, %v397_v43  ;;  %v421_v3 = vsel %vm418_vm13, %v420_v62, %v416_v59 }
 0x156   : > { %v406_v49 = vsel %vm403_vm6, %v405_v44, %v401_v47  ;;  %v308_v50 = vsel %vm307_vm7, %v629_v29, %v304_v45 }
 0x157   : > { %v633_v51 = vpop.eup %632  ;;  %425 = vperm.xlu1 %617, %v406_v49   ;;  %v313_v52 = vsel %vm310_vm8, %v312_v48, %v308_v50 }
 0x158   : > { %332 = vperm.xlu2 %615, %v313_v52   ;;  %v316_v54 = vmul.f32 %v633_v51, %v299_v33  ;;  %vm321_vm12 = vweird.f32 %v633_v51 }
 0x159   : > { %vm322_vm15 = vmor %vm320_vm14, %vm321_vm12 }
 0x15a   : > { %v317_v57 = vsub.f32 1.0, %v316_v54 }
 0x15c   : > { %v318_v60 = vmul.f32 %v633_v51, %v317_v57 }
 0x15e   : > { %v319_v63 = vadd.f32 %v633_v51, %v318_v60 }
 0x160   : > { %430 = vperm.xlu2 %615, %v421_v3   ;;  %v323_v10 = vsel %vm322_vm15, %v633_v51, %v319_v63 }
 0x161   : > { %v328_v11 = vsel %vm325_vm0, %v327_v5, %v323_v10 }
 0x162   : > { %337 = vperm.xlu0 %616, %v328_v11  }
 0x1b2   : > { %v333_v12 = vpop.permute.xlu2 %332 }
 0x1b3   : > { %v340_v13 = vmul.f32 %v333_v12, %v867_v2  ;;  %v341_v14 = vmul.f32 %v333_v12, %v871_v4 }
 0x1b5   : > { %344 = vst [vmem:[%s245_s29] sm:$0xff] %v340_v13 }
 0x1b6   : > { %345 = vst [vmem:[%s245_s29 + $0x8] sm:$0xff] %v341_v14 }
 0x1ba   : > { %v431_v15 = vpop.permute.xlu2 %430 }
 0x1bb   : > { %v435_v16 = vmul.f32 %v875_v6, %v431_v15  ;;  %v436_v17 = vmul.f32 %v877_v7, %v431_v15 }
 0x1bd   : > { %552 = vst [vmem:[%s245_s29 + $0x30] sm:$0xff] %v435_v16 }
 0x1be   : > { %553 = vst [vmem:[%s245_s29 + $0x38] sm:$0xff] %v436_v17 }
 0x1c9   : > { %v426_v18 = vpop.permute.xlu1 %425 }
 0x1ca   : > { %v433_v19 = vmul.f32 %v863_v0, %v426_v18  ;;  %v434_v20 = vmul.f32 %v865_v1, %v426_v18 }
 0x1cc   : > { %550 = vst [vmem:[%s245_s29 + $0x20] sm:$0xff] %v433_v19 }
 0x1cd   : > { %551 = vst [vmem:[%s245_s29 + $0x28] sm:$0xff] %v434_v20 }
 0x1d4   : > { %v338_v2 = vpop.permute.xlu0 %337 }
 0x1d5   : > { %v342_v4 = vmul.f32 %v338_v2, %v879_v8  ;;  %v343_v6 = vmul.f32 %v338_v2, %v881_v9 }
 0x1d7   : > { %346 = vst [vmem:[%s245_s29 + $0x10] sm:$0xff] %v342_v4 }
 0x1d8   : > { %347 = vst [vmem:[%s245_s29 + $0x18] sm:$0xff] %v343_v6 }
 0x1d9   : > { %691 = shalt.err (!%p688_p4)
}
 0x1da   : > { %s735_s12 = smov 256   ;;  %s736_s25 = smov 16  }
 0x1db   : > { %566 = dma.vmem_to_hbm [thread:$0]  (%p817_p11), %s457_s17, 1024, %s459_s26, %s443_s8, %s735_s12, %s735_s12, %s736_s25  }
 0x1dc PF: > { %s473_s29 = sand.u32 1, %s718_s18   ;;  %p970_p7 = scmp.ge.s32.totalorder %s730_s21, 2 }
 0x1dd   : > { %s474_s13 = scalar_lea.sflag [#allocation4], %s473_s29 }
 0x1de   : > { %p573_p5 = pnand %p970_p7, %p821_p12 }
 0x1e0   : > { %p574_p8 = pneg %p573_p5 }
 0x1e2   : > { %713 = dma.done.wait (%p574_p8), %s474_s13, 1024  }
 0x1e3   : > { %715 = vsyncadd (%p574_p8), %s474_s13, 4294966272  ;;  %p18_p10 = scmp.ge.s32.totalorder %s792_s24, 4   ;;  %s971_s18 = smov %s722_s19 }
 0x1e4   : > { %s972_s19 = smov %s726_s20  ;;  %s973_s20 = smov %s804_s27 }
 0x1e5   : > { %s974_s21 = smov %s792_s24  ;;  %20 = sbr.rel (!%p18_p10) target bundleno = 5 (0x5), region = 87 }
 0x1ea   :  { %480 = vsyncpa [#allocation3], 1 }
 0x1eb   :  { %482 = vsyncpa [#allocation3 + $0x1], 1 }
 0x1ec   :  { %483 = vsyncpa [#allocation4], 1 }
 0x1ed   :  { %485 = vsyncpa [#allocation4 + $0x1], 1 }

</bundles_post_ra>
